<compile_context>
chip_gen: v5e
topology: v5e:2x2
jax: 0.10.0
libtpu: 0.0.40
codegen_flags: <defaults>
</compile_context>

<pallas_src>
import jax
import jax.numpy as jnp
from jax.experimental import pallas as pl
from jax.experimental.pallas import tpu as pltpu


def _linear_kernel(x_ref, w_ref, b_ref, o_ref):
    # One batch tile: (TM, 784)[bf16] @ (784, 10)[bf16] on the MXU with f32
    # accumulate, then f32 broadcast bias add.
    acc = jnp.dot(x_ref[...], w_ref[...], preferred_element_type=jnp.float32)
    o_ref[...] = (acc + b_ref[...]).astype(o_ref.dtype)


def _round_up(x: int, m: int) -> int:
    return ((x + m - 1) // m) * m


def _pick_tile_m(B: int, tm: int | None) -> int:
    """Batch tile size.

    Constraints / goals:
      * layout-legal: multiple of 8 (sublane) or equal to the full batch.
      * >= 2 grid steps once B >= 16 (double-buffered DMA/compute overlap and
        work for both v7x TensorCores).
      * prefer ~8 grid steps while keeping tiles >= 512 rows (measured HBM
        roofline sweet spot), capped at 2048 rows.
    """
    if tm is not None:
        if tm != B and tm % 8 != 0:
            raise ValueError(
                "tm must be a multiple of 8 (sublane-aligned) or equal to B")
        return min(tm, B)
    if B < 16:
        return B                      # single block; equals full dim -> layout OK
    tm = min(2048, _round_up(pl.cdiv(B, 8), 8))   # aim for ~8 grid steps
    tm = max(tm, 512)                              # keep tiles roofline-sized
    tm = min(tm, _round_up(pl.cdiv(B, 2), 8))      # but guarantee >= 2 steps
    tm = max(8, min(tm, _round_up(B, 8)))
    return tm


def origami_control0_forward(x, w_t, b, *, tm=None, compute_dtype=jnp.bfloat16):
    """Forward pass matching OrigamiControl0.

    x   : (B, ...) float — flattened to (B, 784) if >2D
    w_t : (784, 10) float — transposed Linear weight
    b   : (1, 10)   float32 — Linear bias (kept 2D for TPU-friendly layout)
    returns (B, 10) float32
    """
    if x.ndim > 2:
        x = x.reshape(x.shape[0], -1)
    B, F = x.shape
    assert F == w_t.shape[0]
    N = w_t.shape[1]

    # Cast the streamed operands *before* the pallas_call so the HBM-resident
    # copies are already narrow (this is where the bandwidth is saved).
    x_c = x.astype(compute_dtype)
    w_c = w_t.astype(compute_dtype)
    b_f32 = b.astype(jnp.float32)

    TM = _pick_tile_m(B, tm)
    grid = (pl.cdiv(B, TM),)

    itemsize = jnp.dtype(compute_dtype).itemsize
    cost = pl.CostEstimate(
        flops=2 * B * F * N,
        transcendentals=0,
        bytes_accessed=B * F * itemsize + F * N * itemsize + N * 4 + B * N * 4,
    )

    return pl.pallas_call(
        _linear_kernel,
        out_shape=jax.ShapeDtypeStruct((B, N), jnp.float32),
        grid_spec=pltpu.PrefetchScalarGridSpec(
            num_scalar_prefetch=0,
            grid=grid,
            in_specs=[
                # x: tiled along batch (ragged last tile handled by masked store).
                pl.BlockSpec((TM, F), lambda i: (i, 0)),
                # weight / bias: constant index map -> resident in VMEM.
                pl.BlockSpec((F, N), lambda i: (0, 0)),
                pl.BlockSpec((1, N), lambda i: (0, 0)),
            ],
            out_specs=pl.BlockSpec((TM, N), lambda i: (i, 0)),
        ),
        compiler_params=pltpu.CompilerParams(
            # Batch tiles are independent -> shard across TensorCores (v7x).
            dimension_semantics=("parallel",),
            # Explicit scoped-VMEM cap with headroom (usage is a few MB).
            vmem_limit_bytes=32 * 1024 * 1024,
        ),
        cost_estimate=cost,
    )(x_c, w_c, b_f32)


def _reference(x, w_t, b, compute_dtype=jnp.bfloat16):
    """Reference with the same operand rounding as the kernel (bf16 operands,
    f32 accumulate)."""
    if x.ndim > 2:
        x = x.reshape(x.shape[0], -1)
    xr = x.astype(compute_dtype).astype(jnp.float32)
    wr = w_t.astype(compute_dtype).astype(jnp.float32)
    return xr @ wr + b.astype(jnp.float32)


if __name__ == "__main__":
    key = jax.random.PRNGKey(0)
    kx, kw, kb, kx2, kx3 = jax.random.split(key, 5)

    # Deterministic parameter init (mimics nn.Linear's uniform(-1/sqrt(784), 1/sqrt(784))).
    in_features, out_features = 784, 10
    bound = 1.0 / jnp.sqrt(jnp.float32(in_features))
    w = jax.random.uniform(kw, (out_features, in_features), jnp.float32, -bound, bound)
    b = jax.random.uniform(kb, (1, out_features), jnp.float32, -bound, bound)
    w_t = w.T  # (784, 10)

    # Test 1: (B, C, H, W) = (2, 1, 28, 28) -> flattened to (2, 784), grid=(1,).
    x = jax.random.normal(kx, (2, 1, 28, 28), jnp.float32)
    out = origami_control0_forward(x, w_t, b)
    jax.block_until_ready(out)
    assert out.shape == (2, 10)
    ref_bf16 = _reference(x, w_t, b)
    ref_f32 = x.reshape(2, -1) @ w_t + b
    assert jnp.allclose(out, ref_bf16, atol=2e-3, rtol=2e-3)
    assert jnp.allclose(out, ref_f32, atol=5e-2, rtol=5e-2)

    # Test 2: user-supplied tm exercising a ragged last tile: B=20, tm=8 -> 3 steps.
    x2 = jax.random.normal(kx2, (20, 784), jnp.float32)
    out2 = origami_control0_forward(x2, w_t, b, tm=8)
    jax.block_until_ready(out2)
    assert out2.shape == (20, 10)
    assert jnp.allclose(out2, _reference(x2, w_t, b), atol=2e-3, rtol=2e-3)

    # Test 3: auto tile picker with >= 2 grid steps (B=80 -> TM=40, grid=(2,)).
    x3 = jax.random.normal(kx3, (80, 784), jnp.float32)
    out3 = origami_control0_forward(x3, w_t, b)
    jax.block_until_ready(out3)
    assert out3.shape == (80, 10)
    assert jnp.allclose(out3, _reference(x3, w_t, b), atol=2e-3, rtol=2e-3)

    print("KERNEL_OK")
</pallas_src>

<mosaic_0001>
module attributes {stable_mosaic.version = 11 : i64} {
  func.func @_linear_kernel(%arg0: i32, %arg1: memref<2x784xbf16, #tpu.memory_space<vmem>>, %arg2: memref<784x10xbf16, #tpu.memory_space<vmem>>, %arg3: memref<1x10xf32, #tpu.memory_space<vmem>>, %arg4: memref<2x10xf32, #tpu.memory_space<vmem>>) attributes {dimension_semantics = [#tpu.dimension_semantics<parallel>], iteration_bounds = array<i64: 1>, scalar_prefetch = 0 : i64, scratch_operands = 0 : i64, tpu.core_type = #tpu.core_type<tc>, window_params = [{transform_indices = @transform_0, window_bounds = array<i64: 2, 784>}, {pipeline_mode = #tpu.pipeline_mode<synchronous>, transform_indices = @transform_1, window_bounds = array<i64: 784, 10>}, {pipeline_mode = #tpu.pipeline_mode<synchronous>, transform_indices = @transform_2, window_bounds = array<i64: 1, 10>}, {transform_indices = @transform_3, window_bounds = array<i64: 2, 10>}]} {
    %c0 = arith.constant 0 : index
    %c0_0 = arith.constant 0 : index
    %0 = vector.load %arg1[%c0, %c0_0] : memref<2x784xbf16, #tpu.memory_space<vmem>>, vector<2x784xbf16>
    %c0_1 = arith.constant 0 : index
    %c0_2 = arith.constant 0 : index
    %1 = vector.load %arg2[%c0_1, %c0_2] : memref<784x10xbf16, #tpu.memory_space<vmem>>, vector<784x10xbf16>
    %cst = arith.constant dense<0.000000e+00> : vector<2x10xf32>
    %2 = tpu.matmul %0, %1, %cst {dimension_numbers = #tpu.dot_dimension_numbers<[1], [0], [0], [1], [0, 0, 1, 1], [], []>} : vector<2x784xbf16>, vector<784x10xbf16>, vector<2x10xf32> -> vector<2x10xf32>
    %c0_3 = arith.constant 0 : index
    %c0_4 = arith.constant 0 : index
    %3 = vector.load %arg3[%c0_3, %c0_4] : memref<1x10xf32, #tpu.memory_space<vmem>>, vector<1x10xf32>
    %4 = vector.broadcast %3 : vector<1x10xf32> to vector<2x10xf32>
    %5 = arith.addf %2, %4 : vector<2x10xf32>
    %c0_5 = arith.constant 0 : index
    %c0_6 = arith.constant 0 : index
    %6 = vector.load %arg4[%c0_5, %c0_6] : memref<2x10xf32, #tpu.memory_space<vmem>>, vector<2x10xf32>
    tpu.vector_store %arg4[%c0_5, %c0_6], %5 {strides = array<i32>} : memref<2x10xf32, #tpu.memory_space<vmem>>, vector<2x10xf32>,
    return
  }
  func.func @transform_0(%arg0: i32) -> (i32, i32) {
    %c0_i32 = arith.constant 0 : i32
    %c0_i32_0 = arith.constant 0 : i32
    return %arg0, %c0_i32 : i32, i32
  }
  func.func @transform_1(%arg0: i32) -> (i32, i32) {
    %c0_i32 = arith.constant 0 : i32
    %c0_i32_0 = arith.constant 0 : i32
    %c0_i32_1 = arith.constant 0 : i32
    return %c0_i32, %c0_i32_0 : i32, i32
  }
  func.func @transform_2(%arg0: i32) -> (i32, i32) {
    %c0_i32 = arith.constant 0 : i32
    %c0_i32_0 = arith.constant 0 : i32
    %c0_i32_1 = arith.constant 0 : i32
    return %c0_i32, %c0_i32_0 : i32, i32
  }
  func.func @transform_3(%arg0: i32) -> (i32, i32) {
    %c0_i32 = arith.constant 0 : i32
    %c0_i32_0 = arith.constant 0 : i32
    return %arg0, %c0_i32 : i32, i32
  }
}

</mosaic_0001>

<bundles_post_ra>
// kernel: tpu_custom_call.1
= control target key start
LH: loop header
LB: loop body
LE: loop exit
PB: predicated region body
PF: predicated region fallthrough
CT: control target
= control target key end

     0   :  { %s991_s0 = inlined_call_operand.vmem [shape: bf16[2,784], index: 0, kind: input, shape index: {}]   ;;  %s992_s1 = inlined_call_operand.vmem [shape: bf16[784,10], index: 1, kind: input, shape index: {}]   ;;  %s993_s2 = inlined_call_operand.vmem [shape: f32[1,10], index: 2, kind: input, shape index: {}]   ;;  %s994_s3 = inlined_call_operand.hbm [shape: f32[2,10], index: 3, kind: output, shape index: {}]  }
   0x1   :  { %v744_v0 = vld [vmem:[%s992_s1 + $0x38] sm:$0xff]  ;;  %v743_v3 = vld [vmem:[%s992_s1 + $0x30] sm:$0xff]  ;;  %v742_v8 = vld [vmem:[%s992_s1 + $0x28] sm:$0xff] }
   0x2   :  { %v752_v1 = vld [vmem:[%s992_s1 + $0x78] sm:$0xff]  ;;  %431 = vmatpush.bf16.msra.mxu0 %v744_v0  ;;  %v751_v4 = vld [vmem:[%s992_s1 + $0x70] sm:$0xff]  ;;  %v750_v9 = vld [vmem:[%s992_s1 + $0x68] sm:$0xff] }
   0x3   :  { %v760_v2 = vld [vmem:[%s992_s1 + $0xb8] sm:$0xff]  ;;  %444 = vmatpush.bf16.msra.mxu1 %v752_v1  ;;  %v759_v5 = vld [vmem:[%s992_s1 + $0xb0] sm:$0xff]  ;;  %v758_v10 = vld [vmem:[%s992_s1 + $0xa8] sm:$0xff] }
   0x4   :  { %457 = vmatpush.bf16.msra.mxu2 %v760_v2  ;;  %v768_v6 = vld [vmem:[%s992_s1 + $0xf8] sm:$0xff]  ;;  %v767_v7 = vld [vmem:[%s992_s1 + $0xf0] sm:$0xff]  ;;  %v766_v11 = vld [vmem:[%s992_s1 + $0xe8] sm:$0xff] }
   0x5   :  { %470 = vmatpush.bf16.msra.mxu3 %v768_v6  ;;  %v741_v12 = vld [vmem:[%s992_s1 + $0x20] sm:$0xff]  ;;  %v740_v17 = vld [vmem:[%s992_s1 + $0x18] sm:$0xff] }
   0x6   :  { %432 = vmatpush.bf16.msra.mxu0 %v743_v3  ;;  %v749_v13 = vld [vmem:[%s992_s1 + $0x60] sm:$0xff]  ;;  %v748_v18 = vld [vmem:[%s992_s1 + $0x58] sm:$0xff] }
   0x7   :  { %445 = vmatpush.bf16.msra.mxu1 %v751_v4  ;;  %v16_v14 = vld [vmem:[%s991_s0] sm:$0x7f]  ;;  %v756_v19 = vld [vmem:[%s992_s1 + $0x98] sm:$0xff] }
   0x8   :  { %458 = vmatpush.bf16.msra.mxu2 %v759_v5  ;;  %v757_v15 = vld [vmem:[%s992_s1 + $0xa0] sm:$0xff]  ;;  %120 = vst [vmem:[#allocation1] ss:$9 sm:$0xff] %v16_v14 }
   0x9   :  { %471 = vmatpush.bf16.msra.mxu3 %v767_v7  ;;  %v765_v16 = vld [vmem:[%s992_s1 + $0xe0] sm:$0xff] }
   0xa   :  { %433 = vmatpush.bf16.msra.mxu0 %v742_v8 }
   0xb   :  { %446 = vmatpush.bf16.msra.mxu1 %v750_v9 }
   0xc   :  { %459 = vmatpush.bf16.msra.mxu2 %v758_v10 }
   0xd   :  { %472 = vmatpush.bf16.msra.mxu3 %v766_v11 }
   0xe   :  { %434 = vmatpush.bf16.msra.mxu0 %v741_v12 }
   0xf   :  { %447 = vmatpush.bf16.msra.mxu1 %v749_v13 }
  0x10   :  { %460 = vmatpush.bf16.msra.mxu2 %v757_v15 }
  0x11   :  { %8 = vsyncpa [#allocation3], 0  ;;  %473 = vmatpush.bf16.msra.mxu3 %v765_v16  ;;  %v764_v20 = vld [vmem:[%s992_s1 + $0xd8] sm:$0xff]  ;;  %v739_v21 = vld [vmem:[%s992_s1 + $0x10] sm:$0xff]  ;;  %vm428_vm0 = vcmask 130048   ;;  %s531_s6 = sshll.u32 %s994_s3, 4  ;;  %s532_s6 = int_to_ptr.hbm [resolvable:$true] %s531_s6 }
  0x12   :  { %435 = vmatpush.bf16.msra.mxu0 %v740_v17  ;;  %v747_v22 = vld [vmem:[%s992_s1 + $0x50] sm:$0xff]  ;;  %v738_v25 = vld [vmem:[%s992_s1 + $0x8] sm:$0xff]  ;;  %v737_v29 = vld [vmem:[%s992_s1] sm:$0xff]  ;;  %vm522_vm1 = vcmask 74752  }
  0x13   :  { %448 = vmatpush.bf16.msra.mxu1 %v748_v18  ;;  %v755_v23 = vld [vmem:[%s992_s1 + $0x90] sm:$0xff]  ;;  %v746_v26 = vld [vmem:[%s992_s1 + $0x48] sm:$0xff]  ;;  %v745_v30 = vld [vmem:[%s992_s1 + $0x40] sm:$0xff] }
  0x14   :  { %461 = vmatpush.bf16.msra.mxu2 %v756_v19  ;;  %v763_v24 = vld [vmem:[%s992_s1 + $0xd0] sm:$0xff]  ;;  %v754_v27 = vld [vmem:[%s992_s1 + $0x88] sm:$0xff]  ;;  %v753_v31 = vld [vmem:[%s992_s1 + $0x80] sm:$0xff] }
  0x15   :  { %474 = vmatpush.bf16.msra.mxu3 %v764_v20  ;;  %v762_v28 = vld [vmem:[%s992_s1 + $0xc8] sm:$0xff]  ;;  %v776_v32 = vld [vmem:[%s992_s1 + $0x138] sm:$0xff]  ;;  %v785_v34 = vld [vmem:[%s992_s1 + $0x180] sm:$0xff] }
  0x16   :  { %436 = vmatpush.bf16.msra.mxu0 %v739_v21  ;;  %v784_v33 = vld [vmem:[%s992_s1 + $0x178] sm:$0xff]  ;;  %v121_v35 = vld [vmem:[#allocation1] sm:$0xff]  ;;  %v122_v36 = vld [vmem:[#allocation1 + $0x9] sm:$0xff] }
  0x17   :  { %449 = vmatpush.bf16.msra.mxu1 %v747_v22  ;;  %v761_v37 = vld [vmem:[%s992_s1 + $0xc0] sm:$0xff]  ;;  %v123_v38 = vld [vmem:[#allocation1 + $0x12] sm:$0xff]  ;;  %v774_v42 = vld [vmem:[%s992_s1 + $0x128] sm:$0xff] }
  0x18   :  { %462 = vmatpush.bf16.msra.mxu2 %v755_v23  ;;  %v775_v39 = vld [vmem:[%s992_s1 + $0x130] sm:$0xff]  ;;  %v124_v41 = vld [vmem:[#allocation1 + $0x1b] sm:$0xff]  ;;  %v782_v43 = vld [vmem:[%s992_s1 + $0x168] sm:$0xff] }
  0x19   :  { %475 = vmatpush.bf16.msra.mxu3 %v763_v24  ;;  %v783_v40 = vld [vmem:[%s992_s1 + $0x170] sm:$0xff]  ;;  %v773_v44 = vld [vmem:[%s992_s1 + $0x120] sm:$0xff]  ;;  %v772_v46 = vld [vmem:[%s992_s1 + $0x118] sm:$0xff] }
  0x1a   :  { %437 = vmatpush.bf16.msra.mxu0 %v738_v25  ;;  %v781_v45 = vld [vmem:[%s992_s1 + $0x160] sm:$0xff]  ;;  %v780_v47 = vld [vmem:[%s992_s1 + $0x158] sm:$0xff]  ;;  %v771_v49 = vld [vmem:[%s992_s1 + $0x110] sm:$0xff] }
  0x1b   :  { %450 = vmatpush.bf16.msra.mxu1 %v746_v26  ;;  %v127_v48 = vld [vmem:[#allocation1 + $0x36] sm:$0xff]  ;;  %v770_v51 = vld [vmem:[%s992_s1 + $0x108] sm:$0xff]  ;;  %v769_v53 = vld [vmem:[%s992_s1 + $0x100] sm:$0xff] }
  0x1c   :  { %463 = vmatpush.bf16.msra.mxu2 %v754_v27  ;;  %v779_v50 = vld [vmem:[%s992_s1 + $0x150] sm:$0xff]  ;;  %v778_v52 = vld [vmem:[%s992_s1 + $0x148] sm:$0xff]  ;;  %v777_v54 = vld [vmem:[%s992_s1 + $0x140] sm:$0xff]  ;;  %s814_s1 = smov [#allocation2]  }
  0x1d   :  { %476 = vmatpush.bf16.msra.mxu3 %v762_v28  ;;  %v125_v55 = vld [vmem:[#allocation1 + $0x24] sm:$0xff]  ;;  %v126_v56 = vld [vmem:[#allocation1 + $0x2d] sm:$0xff]  ;;  %v787_v63 = vld [vmem:[%s993_s2] ss:$0 sm:$0xff]  ;;  %s529_s30 = sshll.u32 %s814_s1, 4  ;;  %s530_s30 = int_to_ptr.vmem [resolvable:$true] %s529_s30 }
  0x1e   :  { %438 = vmatpush.bf16.msra.mxu0 %v737_v29 }
  0x1f   :  { %451 = vmatpush.bf16.msra.mxu1 %v745_v30 }
  0x20   :  { %464 = vmatpush.bf16.msra.mxu2 %v753_v31 }
  0x21   :  { %439 = vmatmul.bf16.vlgmr.msra.gmra.mxu0 %v121_v35  ;;  %477 = vmatpush.bf16.msra.mxu3 %v761_v37 }
  0x22   :  { %483 = vmatpush.bf16.msrb.mxu0 %v776_v32  ;;  %452 = vmatmul.bf16.vlgmr.msra.gmra.mxu1 %v122_v36 }
  0x23   :  { %496 = vmatpush.bf16.msrb.mxu1 %v784_v33  ;;  %465 = vmatmul.bf16.vlgmr.msra.gmra.mxu2 %v123_v38 }
  0x24   :  { %516 = vmatpush.bf16.msrb.mxu2 %v785_v34  ;;  %478 = vmatmul.bf16.vlgmr.msra.gmra.mxu3 %v124_v41 }
  0x26   :  { %484 = vmatpush.bf16.msrb.mxu0 %v775_v39 }
  0x27   :  { %497 = vmatpush.bf16.msrb.mxu1 %v783_v40 }
  0x2a   :  { %485 = vmatpush.bf16.msrb.mxu0 %v774_v42 }
  0x2b   :  { %498 = vmatpush.bf16.msrb.mxu1 %v782_v43 }
  0x2e   :  { %486 = vmatpush.bf16.msrb.mxu0 %v773_v44 }
  0x2f   :  { %499 = vmatpush.bf16.msrb.mxu1 %v781_v45 }
  0x32   :  { %487 = vmatpush.bf16.msrb.mxu0 %v772_v46 }
  0x33   :  { %500 = vmatpush.bf16.msrb.mxu1 %v780_v47  ;;  %736 = vmatmul.msk.bf16.vlgmr.msrb.gmra.mxu2 %vm428_vm0, %v127_v48 }
  0x36   :  { %488 = vmatpush.bf16.msrb.mxu0 %v771_v49 }
  0x37   :  { %501 = vmatpush.bf16.msrb.mxu1 %v779_v50 }
  0x3a   :  { %489 = vmatpush.bf16.msrb.mxu0 %v770_v51 }
  0x3b   :  { %502 = vmatpush.bf16.msrb.mxu1 %v778_v52 }
  0x3e   :  { %490 = vmatpush.bf16.msrb.mxu0 %v769_v53 }
  0x3f   :  { %503 = vmatpush.bf16.msrb.mxu1 %v777_v54 }
  0x41   :  { %491 = vmatmul.bf16.vlgmr.msrb.gmra.mxu0 %v125_v55 }
  0x42   :  { %504 = vmatmul.bf16.vlgmr.msrb.gmra.mxu1 %v126_v56 }
  0x9e   :  { %v440_v57 = vpop.f32.mrf.mxu0 }
  0x9f   :  { %v453_v58 = vpop.f32.mrf.mxu1  ;;  %v441_v1 = vadd.f32 %v787_v63, %v440_v57 }
  0xa1   :  { %v454_v3 = vadd.f32 %v453_v58, %v441_v1 }
  0xa6   :  { %v466_v59 = vpop.f32.mrf.mxu2  ;;  %v442_v60 = vpop.f32.mrf.mxu0 }
  0xa7   :  { %v455_v61 = vpop.f32.mrf.mxu1  ;;  %v479_v62 = vpop.f32.mrf.mxu3  ;;  %v467_v5 = vadd.f32 %v466_v59, %v454_v3 }
  0xa9   :  { %v480_v6 = vadd.f32 %v479_v62, %v467_v5 }
  0xae   :  { %v468_v0 = vpop.f32.mrf.mxu2 }
  0xaf   :  { %v481_v2 = vpop.f32.mrf.mxu3 }
  0xb6   :  { %v518_v4 = vpop.f32.mrf.mxu2 }
  0xbe   :  { %v492_v7 = vpop.f32.mrf.mxu0  ;;  %v520_v10 = vpop.f32.mrf.mxu2 }
  0xbf   :  { %v493_v8 = vadd.f32 %v492_v7, %v480_v6  ;;  %v505_v9 = vpop.f32.mrf.mxu1 }
  0xc1   :  { %v506_v11 = vadd.f32 %v505_v9, %v493_v8 }
  0xc3   :  { %v519_v12 = vadd.f32 %v518_v4, %v506_v11 }
  0xc5   :  { %523 = vst.msk [vmem:[#allocation2] sm:$0x3] %vm522_vm1, %v519_v12 }
  0xc6   :  { %v494_v13 = vpop.f32.mrf.mxu0  ;;  %534 = dma.vmem_to_hbm [thread:$0]  %s530_s30, 32, %s532_s6, [#allocation3]  }
  0xc7   :  { %v507_v14 = vpop.f32.mrf.mxu1 }
  0xc8   :  { %812 = dma.done.wait [#allocation3], 32  }
  0xc9   :  { %813 = vsyncadd [#allocation3], 4294967264 }
  0xca   :  { %539 = vsyncpa [#allocation3], 1 }

</bundles_post_ra>
